<compile_context>
chip_gen: v7x
topology: tpu7x:2x2x1
jax: 0.10.0
libtpu: 0.0.40
codegen_flags: <defaults>
</compile_context>

<pallas_src>
import functools

import jax
import jax.numpy as jnp
from jax.experimental import pallas as pl
from jax.experimental.pallas import tpu as pltpu


def _round_up(n: int, m: int) -> int:
    return ((n + m - 1) // m) * m


def _fused_mlp_kernel(x_ref, w_ref, b_ref, o_ref, *, num_layers: int):
    """o = relu(...relu(x @ W0 + b0)...) @ W_{L-1} + b_{L-1}   (no final activation).

    x_ref: [TB, Dp] f32, w_ref: [L, Dp, Dp] bf16, b_ref: [L, 1, Dp] f32.
    """
    h = x_ref[...]                                        # [TB, Dp] f32
    for i in range(num_layers):
        w = w_ref[i]                                      # [Dp, Dp] bf16 (static slice)
        b = b_ref[i]                                      # [1, Dp]  f32  (lane broadcast)
        h = jnp.dot(h.astype(jnp.bfloat16), w,
                    preferred_element_type=jnp.float32) + b
        if i < num_layers - 1:
            h = jnp.maximum(h, 0.0)                       # ReLU in f32 (v5e-safe VPU)
    o_ref[...] = h                                        # f32, lane-dense store


def fused_mlp_pallas(x_pad, w_stack, b_stack, *, batch_tile):
    """x_pad: [Bp, Dp] f32, w_stack: [L, Dp, Dp] bf16, b_stack: [L, 1, Dp] f32."""
    Bp, Dp = x_pad.shape
    L = w_stack.shape[0]
    assert Bp % batch_tile == 0

    flops = 2 * Bp * L * Dp * Dp
    bytes_accessed = (x_pad.size * 4 + w_stack.size * 2
                      + b_stack.size * 4 + Bp * Dp * 4)

    kernel = functools.partial(_fused_mlp_kernel, num_layers=L)
    return pl.pallas_call(
        kernel,
        out_shape=jax.ShapeDtypeStruct((Bp, Dp), jnp.float32),
        grid=(Bp // batch_tile,),
        in_specs=[
            pl.BlockSpec((batch_tile, Dp), lambda i: (i, 0)),   # batch tile of x
            pl.BlockSpec((L, Dp, Dp), lambda i: (0, 0, 0)),     # all weights, resident
            pl.BlockSpec((L, 1, Dp), lambda i: (0, 0, 0)),      # all biases, resident
        ],
        out_specs=pl.BlockSpec((batch_tile, Dp), lambda i: (i, 0)),
        compiler_params=pltpu.CompilerParams(
            dimension_semantics=("parallel",),                  # shard batch tiles on v7x
        ),
        cost_estimate=pl.CostEstimate(
            flops=flops, transcendentals=0, bytes_accessed=bytes_accessed),
    )(x_pad, w_stack, b_stack)


def init_params(key, input_dim, output_dim, hidden_dim):
    """nn.Linear-style U(-1/sqrt(fan_in), 1/sqrt(fan_in)) init.

    Returns (w_stack [L, Dp, Dp] bf16, b_stack [L, 1, Dp] f32, unpadded f32 list).
    All feature dims are zero-padded to a common lane-dense width Dp (multiple
    of 128); zero rows/cols + zero bias contribute nothing and ReLU(0)=0, so
    the padded math is exact on the real entries.
    """
    dims = [input_dim] + list(hidden_dim) + [output_dim]
    L = len(dims) - 1
    Dp = _round_up(max(dims), 128)

    w_stack = jnp.zeros((L, Dp, Dp), jnp.float32)
    b_stack = jnp.zeros((L, 1, Dp), jnp.float32)
    unpadded = []
    for i in range(L):
        din, dout = dims[i], dims[i + 1]
        key, kw, kb = jax.random.split(key, 3)
        bound = float(din) ** -0.5
        # stored as [in, out] (transpose of PyTorch's [out, in])
        w = jax.random.uniform(kw, (din, dout), jnp.float32, -bound, bound)
        b = jax.random.uniform(kb, (1, dout), jnp.float32, -bound, bound)
        unpadded.append((w, b))
        w_stack = w_stack.at[i, :din, :dout].set(w)
        b_stack = b_stack.at[i, :, :dout].set(b)
    return w_stack.astype(jnp.bfloat16), b_stack, unpadded


@functools.partial(jax.jit, static_argnames=("output_dim",))
def net_forward(x, w_stack, b_stack, *, output_dim):
    """Reproduces Net.forward (ReLU on all layers except the last) with one
    fused Pallas call; pads the input and slices the output inside the jit."""
    B, Din = x.shape
    Dp = w_stack.shape[-1]
    Bp = _round_up(B, 16)                 # 16 sublanes: safe for the bf16 dot LHS
    batch_tile = Bp if Bp <= 256 else 256  # >=256-row tiles -> 2 TCs on v7x
    Bp = _round_up(Bp, batch_tile)
    x_pad = jnp.zeros((Bp, Dp), jnp.float32).at[:B, :Din].set(x.astype(jnp.float32))
    out_pad = fused_mlp_pallas(x_pad, w_stack, b_stack, batch_tile=batch_tile)
    return out_pad[:B, :output_dim]       # drop padded rows/cols (rows are NOT zero)


if __name__ == "__main__":
    # Small shapes consistent with the module: Net(input_dim=32, output_dim=16,
    # hidden_dim=[64, 48]) applied to a batch of 8 vectors.
    input_dim, output_dim, hidden_dim = 32, 16, [64, 48]
    batch = 8

    key = jax.random.PRNGKey(0)
    key, kx = jax.random.split(key)
    x = jax.random.normal(kx, (batch, input_dim), jnp.float32)
    w_stack, b_stack, unpadded_params = init_params(key, input_dim, output_dim, hidden_dim)

    out = net_forward(x, w_stack, b_stack, output_dim=output_dim)
    jax.block_until_ready(out)
    assert out.shape == (batch, output_dim)

    # Reference 1: same math with bf16 weights / f32 accumulation (matches kernel precision).
    ref_bf = x
    for i, (w, b) in enumerate(unpadded_params):
        ref_bf = jnp.dot(ref_bf.astype(jnp.bfloat16), w.astype(jnp.bfloat16),
                         preferred_element_type=jnp.float32) + b
        if i < len(unpadded_params) - 1:
            ref_bf = jnp.maximum(ref_bf, 0.0)
    assert jnp.allclose(out, ref_bf, atol=2e-3, rtol=2e-3), "mismatch vs bf16 reference"

    # Reference 2: full-f32 PyTorch-equivalent forward (loose tolerance due to bf16 weights).
    ref_f32 = x
    for w, b in unpadded_params[:-1]:
        ref_f32 = jnp.maximum(ref_f32 @ w + b, 0.0)
    ref_f32 = ref_f32 @ unpadded_params[-1][0] + unpadded_params[-1][1]
    assert jnp.allclose(out, ref_f32, atol=5e-2, rtol=5e-2), "mismatch vs f32 reference"

    print("KERNEL_OK")
</pallas_src>

<mosaic_0001>
module attributes {stable_mosaic.version = 11 : i64} {
  func.func @_fused_mlp_kernel(%arg0: i32, %arg1: memref<16x128xf32, #tpu.memory_space<vmem>>, %arg2: memref<3x128x128xbf16, #tpu.memory_space<vmem>>, %arg3: memref<3x1x128xf32, #tpu.memory_space<vmem>>, %arg4: memref<16x128xf32, #tpu.memory_space<vmem>>) attributes {dimension_semantics = [#tpu.dimension_semantics<parallel>], iteration_bounds = array<i64: 1>, scalar_prefetch = 0 : i64, scratch_operands = 0 : i64, tpu.core_type = #tpu.core_type<tc>, window_params = [{transform_indices = @transform_0, window_bounds = array<i64: 16, 128>}, {pipeline_mode = #tpu.pipeline_mode<synchronous>, transform_indices = @transform_1, window_bounds = array<i64: 3, 128, 128>}, {pipeline_mode = #tpu.pipeline_mode<synchronous>, transform_indices = @transform_2, window_bounds = array<i64: 3, 1, 128>}, {transform_indices = @transform_3, window_bounds = array<i64: 16, 128>}]} {
    %c0 = arith.constant 0 : index
    %c0_0 = arith.constant 0 : index
    %0 = vector.load %arg1[%c0, %c0_0] : memref<16x128xf32, #tpu.memory_space<vmem>>, vector<16x128xf32>
    %c0_1 = arith.constant 0 : index
    %c0_2 = arith.constant 0 : index
    %c0_3 = arith.constant 0 : index
    %1 = vector.load %arg2[%c0_1, %c0_2, %c0_3] : memref<3x128x128xbf16, #tpu.memory_space<vmem>>, vector<1x128x128xbf16>
    %2 = vector.shape_cast %1 : vector<1x128x128xbf16> to vector<128x128xbf16>
    %c0_4 = arith.constant 0 : index
    %c0_5 = arith.constant 0 : index
    %c0_6 = arith.constant 0 : index
    %3 = vector.load %arg3[%c0_4, %c0_5, %c0_6] : memref<3x1x128xf32, #tpu.memory_space<vmem>>, vector<1x1x128xf32>
    %4 = vector.shape_cast %3 : vector<1x1x128xf32> to vector<1x128xf32>
    %5 = arith.truncf %0 : vector<16x128xf32> to vector<16x128xbf16>
    %cst = arith.constant dense<0.000000e+00> : vector<16x128xf32>
    %6 = tpu.matmul %5, %2, %cst {dimension_numbers = #tpu.dot_dimension_numbers<[1], [0], [0], [1], [0, 0, 1, 1], [], []>} : vector<16x128xbf16>, vector<128x128xbf16>, vector<16x128xf32> -> vector<16x128xf32>
    %7 = vector.broadcast %4 : vector<1x128xf32> to vector<16x128xf32>
    %8 = arith.addf %6, %7 : vector<16x128xf32>
    %cst_7 = arith.constant 0.000000e+00 : f32
    %9 = vector.broadcast %cst_7 : f32 to vector<16x128xf32>
    %10 = arith.maximumf %8, %9 : vector<16x128xf32>
    %c1 = arith.constant 1 : index
    %c0_8 = arith.constant 0 : index
    %c0_9 = arith.constant 0 : index
    %11 = vector.load %arg2[%c1, %c0_8, %c0_9] : memref<3x128x128xbf16, #tpu.memory_space<vmem>>, vector<1x128x128xbf16>
    %12 = vector.shape_cast %11 : vector<1x128x128xbf16> to vector<128x128xbf16>
    %c1_10 = arith.constant 1 : index
    %c0_11 = arith.constant 0 : index
    %c0_12 = arith.constant 0 : index
    %13 = vector.load %arg3[%c1_10, %c0_11, %c0_12] : memref<3x1x128xf32, #tpu.memory_space<vmem>>, vector<1x1x128xf32>
    %14 = vector.shape_cast %13 : vector<1x1x128xf32> to vector<1x128xf32>
    %15 = arith.truncf %10 : vector<16x128xf32> to vector<16x128xbf16>
    %cst_13 = arith.constant dense<0.000000e+00> : vector<16x128xf32>
    %16 = tpu.matmul %15, %12, %cst_13 {dimension_numbers = #tpu.dot_dimension_numbers<[1], [0], [0], [1], [0, 0, 1, 1], [], []>} : vector<16x128xbf16>, vector<128x128xbf16>, vector<16x128xf32> -> vector<16x128xf32>
    %17 = vector.broadcast %14 : vector<1x128xf32> to vector<16x128xf32>
    %18 = arith.addf %16, %17 : vector<16x128xf32>
    %cst_14 = arith.constant 0.000000e+00 : f32
    %19 = vector.broadcast %cst_14 : f32 to vector<16x128xf32>
    %20 = arith.maximumf %18, %19 : vector<16x128xf32>
    %c2 = arith.constant 2 : index
    %c0_15 = arith.constant 0 : index
    %c0_16 = arith.constant 0 : index
    %21 = vector.load %arg2[%c2, %c0_15, %c0_16] : memref<3x128x128xbf16, #tpu.memory_space<vmem>>, vector<1x128x128xbf16>
    %22 = vector.shape_cast %21 : vector<1x128x128xbf16> to vector<128x128xbf16>
    %c2_17 = arith.constant 2 : index
    %c0_18 = arith.constant 0 : index
    %c0_19 = arith.constant 0 : index
    %23 = vector.load %arg3[%c2_17, %c0_18, %c0_19] : memref<3x1x128xf32, #tpu.memory_space<vmem>>, vector<1x1x128xf32>
    %24 = vector.shape_cast %23 : vector<1x1x128xf32> to vector<1x128xf32>
    %25 = arith.truncf %20 : vector<16x128xf32> to vector<16x128xbf16>
    %cst_20 = arith.constant dense<0.000000e+00> : vector<16x128xf32>
    %26 = tpu.matmul %25, %22, %cst_20 {dimension_numbers = #tpu.dot_dimension_numbers<[1], [0], [0], [1], [0, 0, 1, 1], [], []>} : vector<16x128xbf16>, vector<128x128xbf16>, vector<16x128xf32> -> vector<16x128xf32>
    %27 = vector.broadcast %24 : vector<1x128xf32> to vector<16x128xf32>
    %28 = arith.addf %26, %27 : vector<16x128xf32>
    %c0_21 = arith.constant 0 : index
    %c0_22 = arith.constant 0 : index
    %29 = vector.load %arg4[%c0_21, %c0_22] : memref<16x128xf32, #tpu.memory_space<vmem>>, vector<16x128xf32>
    tpu.vector_store %arg4[%c0_21, %c0_22], %28 {strides = array<i32>} : memref<16x128xf32, #tpu.memory_space<vmem>>, vector<16x128xf32>,
    return
  }
  func.func @transform_0(%arg0: i32) -> (i32, i32) {
    %c0_i32 = arith.constant 0 : i32
    %c0_i32_0 = arith.constant 0 : i32
    return %arg0, %c0_i32 : i32, i32
  }
  func.func @transform_1(%arg0: i32) -> (i32, i32, i32) {
    %c0_i32 = arith.constant 0 : i32
    %c0_i32_0 = arith.constant 0 : i32
    %c0_i32_1 = arith.constant 0 : i32
    %c0_i32_2 = arith.constant 0 : i32
    return %c0_i32, %c0_i32_0, %c0_i32_1 : i32, i32, i32
  }
  func.func @transform_2(%arg0: i32) -> (i32, i32, i32) {
    %c0_i32 = arith.constant 0 : i32
    %c0_i32_0 = arith.constant 0 : i32
    %c0_i32_1 = arith.constant 0 : i32
    %c0_i32_2 = arith.constant 0 : i32
    return %c0_i32, %c0_i32_0, %c0_i32_1 : i32, i32, i32
  }
  func.func @transform_3(%arg0: i32) -> (i32, i32) {
    %c0_i32 = arith.constant 0 : i32
    %c0_i32_0 = arith.constant 0 : i32
    return %arg0, %c0_i32 : i32, i32
  }
}

</mosaic_0001>

<bundles_post_ra>
// kernel: net_forward.1
= control target key start
LH: loop header
LB: loop body
LE: loop exit
PB: predicated region body
PF: predicated region fallthrough
CT: control target
= control target key end

     0   :  { %8 = vsyncpa [#allocation3], 0  ;;  %s554_s12 = smov [#allocation2]   ;;  %s642_s0 = inlined_call_operand.vmem [shape: f32[16,128], index: 0, kind: input, shape index: {}]   ;;  %s643_s1 = inlined_call_operand.hbm [shape: bf16[3,128,128], index: 1, kind: input, shape index: {}]   ;;  %s644_s2 = inlined_call_operand.vmem [shape: f32[3,1,128], index: 2, kind: input, shape index: {}]   ;;  %s645_s3 = inlined_call_operand.vmem [shape: f32[16,128], index: 3, kind: output, shape index: {}]  }
   0x1   :  { %s16_s13 = sshll.u32 %s554_s12, 4  ;;  %s530_s16 = scalar_lea.hbm %s643_s1, 3072  ;;  %s17_s13 = int_to_ptr.vmem [resolvable:$true] %s16_s13 }
   0x2   :  { %p531_p0 = scmp.ne.s32.totalorder %s643_s1, %s530_s16  ;;  %p534_p1 = scmp.lt.u32.totalorder %s530_s16, %s643_s1 }
   0x4   :  { %p536_p2 = pnand %p534_p1, %p531_p0 }
   0x6   :  { %539 = shalt.err (!%p536_p2)
}
   0x7   :  { %s540_s21 = scalar_lea.vmem %s17_s13, 3072  ;;  %p545_p4 = scmp.lt.s32.totalorder %s17_s13, %s17_s13 }
   0x8   :  { %p541_p3 = scmp.ne.s32.totalorder %s17_s13, %s540_s21  ;;  %p546_p5 = scmp.lt.s32.totalorder %s540_s21, %s540_s21 }
   0xa   :  { %p547_p6 = por %p546_p5, %p545_p4 }
   0xc   :  { %p548_p7 = pnand %p547_p6, %p541_p3 }
   0xe   :  { %551 = shalt.err (!%p548_p7)
}
   0xf   :  { %s555_s22 = smov 64   ;;  %s556_s23 = smov 4  }
  0x10   :  { %22 = dma.hbm_to_vmem [thread:$0]  %s643_s1, 3072, %s17_s13, [#allocation3], %s555_s22, %s555_s22, %s556_s23  }
  0x11   :  { %552 = dma.done.wait [#allocation3], 3072  }
  0x12   :  { %553 = vsyncadd [#allocation3], 4294964224  ;;  %v557_v0 = vmov 0.0   ;;  %vm558_vm0 = vmmov 0   ;;  %v506_v1 = vld [vmem:[#allocation2] sm:$0xff]   ;;  %v507_v2 = vld [vmem:[#allocation2 + $0x8] sm:$0xff]  }
  0x13   :  { %441 = vmatprep.subr.bf16.mxu0 %v557_v0  ;;  %457 = vmatprep.mubr.msk.bf16.mxu0 %vm558_vm0, %v557_v0  ;;  %v508_v3 = vld [vmem:[#allocation2 + $0x10] sm:$0xff]   ;;  %v514_v4 = vld [vmem:[#allocation2 + $0x40] sm:$0xff]   ;;  %v509_v5 = vld [vmem:[#allocation2 + $0x18] sm:$0xff]  }
  0x14   :  { %461 = vmatprep.subr.bf16.mxu1 %v557_v0  ;;  %477 = vmatprep.mubr.msk.bf16.mxu1 %vm558_vm0, %v557_v0  ;;  %v515_v6 = vld [vmem:[#allocation2 + $0x48] sm:$0xff]   ;;  %v510_v7 = vld [vmem:[#allocation2 + $0x20] sm:$0xff]   ;;  %v516_v8 = vld [vmem:[#allocation2 + $0x50] sm:$0xff]  }
  0x15   :  { %442 = vmatpush3.bf16.msra.mxu0 %v506_v1  ;;  %462 = vmatpush3.bf16.msra.mxu1 %v514_v4  ;;  %v511_v9 = vld [vmem:[#allocation2 + $0x28] sm:$0xff]   ;;  %v517_v10 = vld [vmem:[#allocation2 + $0x58] sm:$0xff]   ;;  %v512_v11 = vld [vmem:[#allocation2 + $0x30] sm:$0xff]  }
  0x16   :  { %443 = vmatprep.subr.bf16.mxu0 %v557_v0  ;;  %463 = vmatprep.subr.bf16.mxu1 %v557_v0  ;;  %v518_v12 = vld [vmem:[#allocation2 + $0x60] sm:$0xff]   ;;  %v513_v13 = vld [vmem:[#allocation2 + $0x38] sm:$0xff]   ;;  %v30_v15 = vld [vmem:[%s642_s0 + $0x8] sm:$0xff] }
  0x17   :  { %v29_v14 = vld [vmem:[%s642_s0] sm:$0xff]  ;;  %v519_v16 = vld [vmem:[#allocation2 + $0x68] sm:$0xff]   ;;  %v520_v18 = vld [vmem:[#allocation2 + $0x70] sm:$0xff]  }
  0x18   :  { %v48_v17 = vpack.c.bf16 %v30_v15, %v29_v14  ;;  %v521_v19 = vld [vmem:[#allocation2 + $0x78] sm:$0xff]   ;;  %v522_v20 = vld [vmem:[#allocation2 + $0x80] sm:$0xff]   ;;  %v523_v21 = vld [vmem:[#allocation2 + $0x88] sm:$0xff]  }
  0x19   :  { %444 = vmatpush3.bf16.msra.mxu0 %v507_v2  ;;  %464 = vmatpush3.bf16.msra.mxu1 %v515_v6  ;;  %v524_v22 = vld [vmem:[#allocation2 + $0x90] sm:$0xff]   ;;  %v525_v23 = vld [vmem:[#allocation2 + $0x98] sm:$0xff]   ;;  %v526_v24 = vld [vmem:[#allocation2 + $0xa0] sm:$0xff]  }
  0x1a   :  { %445 = vmatprep.subr.bf16.mxu0 %v557_v0  ;;  %465 = vmatprep.subr.bf16.mxu1 %v557_v0  ;;  %v527_v25 = vld [vmem:[#allocation2 + $0xa8] sm:$0xff]   ;;  %v385_v26 = vld [vmem:[%s644_s2] ss:$0 sm:$0xff]  ;;  %v528_v36 = vld [vmem:[#allocation2 + $0xb0] sm:$0xff]  }
  0x1b   :  { %v529_v37 = vld [vmem:[#allocation2 + $0xb8] sm:$0xff]   ;;  %v395_v38 = vld [vmem:[%s644_s2 + $0x1] ss:$0 sm:$0xff]  ;;  %v405_v48 = vld [vmem:[%s644_s2 + $0x2] ss:$0 sm:$0xff] }
  0x1d   :  { %446 = vmatpush3.bf16.msra.mxu0 %v508_v3  ;;  %466 = vmatpush3.bf16.msra.mxu1 %v516_v8 }
  0x1e   :  { %447 = vmatprep.subr.bf16.mxu0 %v557_v0  ;;  %467 = vmatprep.subr.bf16.mxu1 %v557_v0 }
  0x21   :  { %448 = vmatpush3.bf16.msra.mxu0 %v509_v5  ;;  %468 = vmatpush3.bf16.msra.mxu1 %v517_v10 }
  0x22   :  { %449 = vmatprep.subr.bf16.mxu0 %v557_v0  ;;  %469 = vmatprep.subr.bf16.mxu1 %v557_v0 }
  0x25   :  { %450 = vmatpush3.bf16.msra.mxu0 %v510_v7  ;;  %470 = vmatpush3.bf16.msra.mxu1 %v518_v12 }
  0x26   :  { %451 = vmatprep.subr.bf16.mxu0 %v557_v0  ;;  %471 = vmatprep.subr.bf16.mxu1 %v557_v0 }
  0x29   :  { %452 = vmatpush3.bf16.msra.mxu0 %v511_v9  ;;  %472 = vmatpush3.bf16.msra.mxu1 %v519_v16 }
  0x2a   :  { %453 = vmatprep.subr.bf16.mxu0 %v557_v0  ;;  %473 = vmatprep.subr.bf16.mxu1 %v557_v0 }
  0x2d   :  { %454 = vmatpush3.bf16.msra.mxu0 %v512_v11  ;;  %474 = vmatpush3.bf16.msra.mxu1 %v520_v18 }
  0x2e   :  { %455 = vmatprep.subr.bf16.mxu0 %v557_v0  ;;  %475 = vmatprep.subr.bf16.mxu1 %v557_v0 }
  0x31   :  { %456 = vmatpush3.bf16.msra.mxu0 %v513_v13  ;;  %476 = vmatpush3.bf16.msra.mxu1 %v521_v19 }
  0x32   :  { %481 = vmatprep.subr.bf16.mxu0 %v557_v0 }
  0x34   :  { %458 = vmatmul.mubr.bf16.vlgmr.msra.gmra.mrb[0].mxu0 %v48_v17 }
  0x35   :  { %497 = vmatprep.mubr.msk.bf16.mxu0 %vm558_vm0, %v557_v0  ;;  %482 = vmatpush3.bf16.msra.mxu0 %v522_v20 }
  0x36   :  { %483 = vmatprep.subr.bf16.mxu0 %v557_v0 }
  0x39   :  { %484 = vmatpush3.bf16.msra.mxu0 %v523_v21 }
  0x3a   :  { %485 = vmatprep.subr.bf16.mxu0 %v557_v0 }
  0x3d   :  { %486 = vmatpush3.bf16.msra.mxu0 %v524_v22 }
  0x3e   :  { %487 = vmatprep.subr.bf16.mxu0 %v557_v0 }
  0x41   :  { %488 = vmatpush3.bf16.msra.mxu0 %v525_v23 }
  0x42   :  { %489 = vmatprep.subr.bf16.mxu0 %v557_v0 }
  0x45   :  { %490 = vmatpush3.bf16.msra.mxu0 %v526_v24 }
  0x46   :  { %491 = vmatprep.subr.bf16.mxu0 %v557_v0 }
  0x49   :  { %492 = vmatpush3.bf16.msra.mxu0 %v527_v25 }
  0x4a   :  { %493 = vmatprep.subr.bf16.mxu0 %v557_v0 }
  0x4d   :  { %494 = vmatpush3.bf16.msra.mxu0 %v528_v36 }
  0x4e   :  { %495 = vmatprep.subr.bf16.mxu0 %v557_v0 }
  0x51   :  { %496 = vmatpush3.bf16.msra.mxu0 %v529_v37 }
 0x107   :  { %v137_v27 = vpop.f32.mrb[0].mxu0 }
 0x108   :  { %v138_v28 = vadd.f32 %v385_v26, %v137_v27  ;;  %v459_v29 = vpop.f32.mrb[1].mxu0 }
 0x109   :  { %v140_v30 = vpop.f32.mrb[2].mxu0 }
 0x10a   :  { %v141_v31 = vadd.f32 %v385_v26, %v140_v30  ;;  %v460_v32 = vpop.f32.mrb[3].mxu0  ;;  %v144_v33 = vmax.f32 %v138_v28, 0.0 }
 0x10c   :  { %v145_v34 = vmax.f32 %v141_v31, 0.0 }
 0x10e   :  { %v165_v35 = vpack.c.bf16 %v145_v34, %v144_v33 }
 0x110   :  { %478 = vmatmul.mubr.bf16.vlgmr.msra.gmra.mrb[0].mxu1 %v165_v35 }
 0x1e3   :  { %v254_v39 = vpop.f32.mrb[0].mxu1 }
 0x1e4   :  { %v255_v40 = vadd.f32 %v395_v38, %v254_v39  ;;  %v479_v41 = vpop.f32.mrb[1].mxu1 }
 0x1e5   :  { %v257_v42 = vpop.f32.mrb[2].mxu1 }
 0x1e6   :  { %v258_v43 = vadd.f32 %v395_v38, %v257_v42  ;;  %v480_v44 = vpop.f32.mrb[3].mxu1  ;;  %v261_v45 = vmax.f32 %v255_v40, 0.0 }
 0x1e8   :  { %v262_v46 = vmax.f32 %v258_v43, 0.0 }
 0x1ea   :  { %v282_v47 = vpack.c.bf16 %v262_v46, %v261_v45 }
 0x1ec   :  { %498 = vmatmul.mubr.bf16.vlgmr.msra.gmra.mrb[4].mxu0 %v282_v47 }
 0x2bf   :  { %v371_v49 = vpop.f32.mrb[4].mxu0 }
 0x2c0   :  { %v372_v50 = vadd.f32 %v405_v48, %v371_v49  ;;  %v499_v51 = vpop.f32.mrb[5].mxu0 }
 0x2c1   :  { %v374_v52 = vpop.f32.mrb[6].mxu0 }
 0x2c2   :  { %378 = vst [vmem:[%s645_s3] sm:$0xff] %v372_v50  ;;  %v375_v53 = vadd.f32 %v405_v48, %v374_v52  ;;  %v500_v54 = vpop.f32.mrb[7].mxu0 }
 0x2c4   :  { %379 = vst [vmem:[%s645_s3 + $0x8] sm:$0xff] %v375_v53 }
 0x2c5   :  { %384 = vsyncpa [#allocation3], 1 }

</bundles_post_ra>
